<compile_context>
chip_gen: v6e
topology: v6e:2x2x1
jax: 0.10.0
libtpu: 0.0.40
codegen_flags: <defaults>
</compile_context>

<pallas_src>
import functools

import numpy as np
import jax
import jax.numpy as jnp
from jax import lax
from jax.experimental import pallas as pl
from jax.experimental.pallas import tpu as pltpu

PATCH = 7
PAD = PATCH // 2          # 3-pixel border is invalid
HALO_BLK = 8              # halo rows fetched per side (one sublane block)
STRIP = 8                 # rows processed per inner-loop strip

# Clamped halo blocks at the first/last tile never feed valid outputs only
# because HALO_BLK >= PAD and the mask enforces PAD <= g < H-PAD.
assert HALO_BLK >= PAD


def _round_up(a, m):
    return (a + m - 1) // m * m


# ---------------------------------------------------------------------------
# Kernel 1: channel mean (cast to f32 + lane padding done in-kernel).
# ---------------------------------------------------------------------------
def _mean_kernel(H, x_ref, y_ref, mx_ref, my_ref):
    # x_ref / y_ref: (C, TH, W) raw rows; mx_ref / my_ref: (TH, Wp) f32.
    TH, Wp = mx_ref.shape
    W = x_ref.shape[-1]
    r = pl.program_id(1)

    mx = jnp.mean(x_ref[...].astype(jnp.float32), axis=0)
    my = jnp.mean(y_ref[...].astype(jnp.float32), axis=0)

    # Zero rows past the true image height (last row tile may read OOB garbage).
    row = lax.broadcasted_iota(jnp.int32, (TH, W), 0) + r * TH
    keep = row < H
    mx = jnp.where(keep, mx, 0.0)
    my = jnp.where(keep, my, 0.0)

    if W == Wp:
        mx_ref[...] = mx
        my_ref[...] = my
    else:
        mx_ref[...] = jnp.zeros((TH, Wp), jnp.float32)
        my_ref[...] = jnp.zeros((TH, Wp), jnp.float32)
        mx_ref[:, :W] = mx
        my_ref[:, :W] = my


# ---------------------------------------------------------------------------
# Kernel 2: census-transform loss, per-(batch, row-tile) partial sums.
# ---------------------------------------------------------------------------
def _census_kernel(H, W, TH,
                   xp_ref, xc_ref, xn_ref, yp_ref, yc_ref, yn_ref,
                   out_ref, hx_ref, hy_ref):
    rt = pl.program_id(1)
    Wp = xc_ref.shape[-1]
    nstrips = TH // STRIP

    # Assemble the haloed mean tile with sublane-ALIGNED stores (no misaligned
    # concatenate): rows [0,8) = prev halo, [8,8+TH) = own rows, last 8 = next.
    hx_ref[0:HALO_BLK, :] = xp_ref[...]
    hx_ref[HALO_BLK:HALO_BLK + TH, :] = xc_ref[...]
    hx_ref[HALO_BLK + TH:HALO_BLK + TH + HALO_BLK, :] = xn_ref[...]
    hy_ref[0:HALO_BLK, :] = yp_ref[...]
    hy_ref[HALO_BLK:HALO_BLK + TH, :] = yc_ref[...]
    hy_ref[HALO_BLK + TH:HALO_BLK + TH + HALO_BLK, :] = yn_ref[...]

    # Hoisted strip-shaped iotas for the validity mask.
    li = lax.broadcasted_iota(jnp.int32, (STRIP, Wp), 0)
    lc = lax.broadcasted_iota(jnp.int32, (STRIP, Wp), 1)
    col_ok = (lc >= PAD) & (lc < W - PAD)

    def strip_body(s, total):
        # 24-row aligned slab: scratch rows [s*8, s*8+24) contain the strip's
        # own 8 rows (slab rows 8..15) plus a 3-row halo on each side.
        base = pl.multiple_of(s * STRIP, STRIP)
        sx = hx_ref[pl.ds(base, 3 * STRIP), :]
        sy = hy_ref[pl.ds(base, 3 * STRIP), :]
        cx = sx[STRIP:2 * STRIP, :]          # centre (unshifted) strip
        cy = sy[STRIP:2 * STRIP, :]

        g = li + (rt * TH + s * STRIP)       # global image row of each strip row
        valid = col_ok & (g >= PAD) & (g < H - PAD)

        acc = jnp.zeros((STRIP, Wp), jnp.float32)
        for dy in range(PATCH):
            r0 = STRIP + dy - PAD            # slab row of the dy-shifted strip
            vx = cx if dy == PAD else sx[r0:r0 + STRIP, :]
            vy = cy if dy == PAD else sy[r0:r0 + STRIP, :]
            for dx in range(PATCH):
                if dy == PAD and dx == PAD:
                    continue                 # centre offset contributes exactly 0
                csh = (PAD - dx) % Wp
                ax = pltpu.roll(vx, csh, 1) if csh else vx
                ay = pltpu.roll(vy, csh, 1) if csh else vy

                ldx = ax - cx
                nx = ldx * lax.rsqrt(0.81 + ldx * ldx)
                ldy = ay - cy
                ny = ldy * lax.rsqrt(0.81 + ldy * ldy)

                d = nx - ny
                d2 = d * d
                acc = acc + d2 * pl.reciprocal(0.1 + d2, approx=True)
        return total + jnp.sum(jnp.where(valid, acc, 0.0))

    partial = lax.fori_loop(0, nstrips, strip_body, jnp.float32(0.0))
    out_ref[...] = jnp.full(out_ref.shape, partial, jnp.float32)


# ---------------------------------------------------------------------------
# Wrapper: Ternary().forward(x, y) for NCHW float inputs.
# ---------------------------------------------------------------------------
def ternary_loss(x, y, *, row_tile=128):
    assert x.shape == y.shape and x.ndim == 4
    B, C, H, W = x.shape

    TH = min(_round_up(row_tile, 8), _round_up(H, 8))
    # v7x megacore: expose at least 2 grid steps when the shape allows it.
    while B * pl.cdiv(H, TH) < 2 and TH > 8:
        TH = max(8, (TH // 16) * 8)
    nrt = pl.cdiv(H, TH)
    Hm = nrt * TH                     # mean-image height (padded to full tiles)
    Wp = _round_up(W, 128)            # lane-aligned mean-image width
    th8 = TH // 8

    cparams = pltpu.CompilerParams(
        dimension_semantics=("parallel", "parallel"),
        vmem_limit_bytes=32 * 1024 * 1024)

    # ---- stage 1: channel means (raw NCHW tensors read exactly once) ----
    raw_spec = pl.BlockSpec((None, C, TH, W), lambda b, r: (b, 0, r, 0))
    mean_out = pl.BlockSpec((None, TH, Wp), lambda b, r: (b, r, 0))
    mx, my = pl.pallas_call(
        functools.partial(_mean_kernel, H),
        grid=(B, nrt),
        in_specs=[raw_spec, raw_spec],
        out_specs=[mean_out, mean_out],
        out_shape=[jax.ShapeDtypeStruct((B, Hm, Wp), jnp.float32)] * 2,
        compiler_params=cparams,
    )(x, y)

    # ---- stage 2: census partial sums (current tile + single 8-row halos) ----
    prev8 = pl.BlockSpec((None, 8, Wp),
                         lambda b, r: (b, jnp.maximum(r * th8 - 1, 0), 0))
    cur = pl.BlockSpec((None, TH, Wp), lambda b, r: (b, r, 0))
    next8 = pl.BlockSpec((None, 8, Wp),
                         lambda b, r: (b, jnp.minimum((r + 1) * th8, Hm // 8 - 1), 0))
    out_spec = pl.BlockSpec((None, 1, 8, 128), lambda b, r: (b, r, 0, 0))

    parts = pl.pallas_call(
        functools.partial(_census_kernel, H, W, TH),
        grid=(B, nrt),
        in_specs=[prev8, cur, next8, prev8, cur, next8],
        out_specs=out_spec,
        out_shape=jax.ShapeDtypeStruct((B, nrt, 8, 128), jnp.float32),
        scratch_shapes=[pltpu.VMEM((TH + 2 * HALO_BLK, Wp), jnp.float32),
                        pltpu.VMEM((TH + 2 * HALO_BLK, Wp), jnp.float32)],
        compiler_params=cparams,
    )(mx, mx, mx, my, my, my)

    # dist averages over 49 channels; the masked mean divides by B*1*H*W.
    return parts[:, :, 0, 0].sum() / (PATCH * PATCH * B * H * W)


# ---------------------------------------------------------------------------
# Pure-JAX reference that mirrors the PyTorch module literally (identity-weight
# conv2d, padding, masking) — used only to verify the kernel.
# ---------------------------------------------------------------------------
def _ref_loss(x, y):
    B, C, H, W = x.shape
    w = np.eye(PATCH * PATCH).reshape((PATCH, PATCH, 1, PATCH * PATCH))
    w = np.transpose(w, (3, 2, 0, 1)).astype(np.float32)   # (49, 1, 7, 7) OIHW

    def transform(t):
        tm = jnp.mean(t, axis=1, keepdims=True)
        patches = jax.lax.conv_general_dilated(
            tm, jnp.asarray(w), window_strides=(1, 1),
            padding=[(PAD, PAD), (PAD, PAD)],
            dimension_numbers=("NCHW", "OIHW", "NCHW"))
        loc = patches - tm
        return loc / jnp.sqrt(0.81 + loc * loc)

    lx = transform(x)
    ly = transform(y)
    d = lx - ly
    dist = jnp.mean(d * d / (0.1 + d * d), axis=1, keepdims=True)
    mask = jnp.zeros((B, 1, H, W), x.dtype)
    mask = mask.at[:, :, PAD:H - PAD, PAD:W - PAD].set(1.0)
    return jnp.mean(dist * mask)


if __name__ == "__main__":
    key = jax.random.PRNGKey(0)
    kx, ky = jax.random.split(key)
    B, C, H, W = 2, 4, 16, 16
    x = jax.random.uniform(kx, (B, C, H, W), dtype=jnp.float32)
    y = jax.random.uniform(ky, (B, C, H, W), dtype=jnp.float32)

    loss = jax.block_until_ready(ternary_loss(x, y))
    ref = jax.block_until_ready(_ref_loss(x, y))

    # Tolerance relaxed slightly because the kernel uses the EUP approximate
    # reciprocal for d^2 / (0.1 + d^2).
    assert np.allclose(np.asarray(loss), np.asarray(ref), rtol=5e-3, atol=1e-5), (
        loss, ref)
    print("KERNEL_OK")
</pallas_src>

<mosaic_0001>
module attributes {stable_mosaic.version = 11 : i64} {
  func.func @_mean_kernel(%arg0: i32, %arg1: i32, %arg2: memref<1x4x16x16xf32, #tpu.memory_space<vmem>>, %arg3: memref<1x4x16x16xf32, #tpu.memory_space<vmem>>, %arg4: memref<1x16x128xf32, #tpu.memory_space<vmem>>, %arg5: memref<1x16x128xf32, #tpu.memory_space<vmem>>) attributes {dimension_semantics = [#tpu.dimension_semantics<parallel>, #tpu.dimension_semantics<parallel>], iteration_bounds = array<i64: 2, 1>, scalar_prefetch = 0 : i64, scratch_operands = 0 : i64, tpu.core_type = #tpu.core_type<tc>, window_params = [{transform_indices = @transform_0, window_bounds = array<i64: 1, 4, 16, 16>}, {transform_indices = @transform_1, window_bounds = array<i64: 1, 4, 16, 16>}, {transform_indices = @transform_2, window_bounds = array<i64: 1, 16, 128>}, {transform_indices = @transform_3, window_bounds = array<i64: 1, 16, 128>}]} {
    %c0 = arith.constant 0 : index
    %c0_0 = arith.constant 0 : index
    %c0_1 = arith.constant 0 : index
    %c0_2 = arith.constant 0 : index
    %0 = vector.load %arg2[%c0, %c0_0, %c0_1, %c0_2] : memref<1x4x16x16xf32, #tpu.memory_space<vmem>>, vector<1x4x16x16xf32>
    %1 = vector.shape_cast %0 : vector<1x4x16x16xf32> to vector<4x16x16xf32>
    %cst = arith.constant dense<0.000000e+00> : vector<16x16xf32>
    %2 = vector.multi_reduction <add>, %1, %cst [0] : vector<4x16x16xf32> to vector<16x16xf32>
    %cst_3 = arith.constant 4.000000e+00 : f32
    %3 = vector.broadcast %cst_3 : f32 to vector<16x16xf32>
    %4 = arith.divf %2, %3 : vector<16x16xf32>
    %c0_4 = arith.constant 0 : index
    %c0_5 = arith.constant 0 : index
    %c0_6 = arith.constant 0 : index
    %c0_7 = arith.constant 0 : index
    %5 = vector.load %arg3[%c0_4, %c0_5, %c0_6, %c0_7] : memref<1x4x16x16xf32, #tpu.memory_space<vmem>>, vector<1x4x16x16xf32>
    %6 = vector.shape_cast %5 : vector<1x4x16x16xf32> to vector<4x16x16xf32>
    %cst_8 = arith.constant dense<0.000000e+00> : vector<16x16xf32>
    %7 = vector.multi_reduction <add>, %6, %cst_8 [0] : vector<4x16x16xf32> to vector<16x16xf32>
    %cst_9 = arith.constant 4.000000e+00 : f32
    %8 = vector.broadcast %cst_9 : f32 to vector<16x16xf32>
    %9 = arith.divf %7, %8 : vector<16x16xf32>
    %10 = tpu.iota {dimensions = array<i32: 0>} : vector<16x16xi32>
    %c16_i32 = arith.constant 16 : i32
    %11 = arith.muli %arg1, %c16_i32 : i32
    %12 = vector.broadcast %11 : i32 to vector<16x16xi32>
    %13 = arith.addi %10, %12 : vector<16x16xi32>
    %c16_i32_10 = arith.constant 16 : i32
    %14 = vector.broadcast %c16_i32_10 : i32 to vector<16x16xi32>
    %15 = arith.cmpi slt, %13, %14 : vector<16x16xi32>
    %cst_11 = arith.constant 0.000000e+00 : f32
    %16 = vector.broadcast %cst_11 : f32 to vector<16x16xf32>
    %17 = arith.select %15, %4, %16 : vector<16x16xi1>, vector<16x16xf32>
    %cst_12 = arith.constant 0.000000e+00 : f32
    %18 = vector.broadcast %cst_12 : f32 to vector<16x16xf32>
    %19 = arith.select %15, %9, %18 : vector<16x16xi1>, vector<16x16xf32>
    %cst_13 = arith.constant 0.000000e+00 : f32
    %20 = vector.broadcast %cst_13 : f32 to vector<16x128xf32>
    %c0_14 = arith.constant 0 : index
    %c0_15 = arith.constant 0 : index
    %c0_16 = arith.constant 0 : index
    %21 = vector.load %arg4[%c0_14, %c0_15, %c0_16] : memref<1x16x128xf32, #tpu.memory_space<vmem>>, vector<1x16x128xf32>
    %22 = vector.shape_cast %21 : vector<1x16x128xf32> to vector<16x128xf32>
    %23 = vector.shape_cast %20 : vector<16x128xf32> to vector<1x16x128xf32>
    tpu.vector_store %arg4[%c0_14, %c0_15, %c0_16], %23 {strides = array<i32>} : memref<1x16x128xf32, #tpu.memory_space<vmem>>, vector<1x16x128xf32>,
    %cst_17 = arith.constant 0.000000e+00 : f32
    %24 = vector.broadcast %cst_17 : f32 to vector<16x128xf32>
    %c0_18 = arith.constant 0 : index
    %c0_19 = arith.constant 0 : index
    %c0_20 = arith.constant 0 : index
    %25 = vector.load %arg5[%c0_18, %c0_19, %c0_20] : memref<1x16x128xf32, #tpu.memory_space<vmem>>, vector<1x16x128xf32>
    %26 = vector.shape_cast %25 : vector<1x16x128xf32> to vector<16x128xf32>
    %27 = vector.shape_cast %24 : vector<16x128xf32> to vector<1x16x128xf32>
    tpu.vector_store %arg5[%c0_18, %c0_19, %c0_20], %27 {strides = array<i32>} : memref<1x16x128xf32, #tpu.memory_space<vmem>>, vector<1x16x128xf32>,
    %c0_21 = arith.constant 0 : index
    %c0_22 = arith.constant 0 : index
    %c0_23 = arith.constant 0 : index
    %28 = vector.load %arg4[%c0_21, %c0_22, %c0_23] : memref<1x16x128xf32, #tpu.memory_space<vmem>>, vector<1x16x16xf32>
    %29 = vector.shape_cast %28 : vector<1x16x16xf32> to vector<16x16xf32>
    %30 = vector.shape_cast %17 : vector<16x16xf32> to vector<1x16x16xf32>
    tpu.vector_store %arg4[%c0_21, %c0_22, %c0_23], %30 {strides = array<i32>} : memref<1x16x128xf32, #tpu.memory_space<vmem>>, vector<1x16x16xf32>,
    %c0_24 = arith.constant 0 : index
    %c0_25 = arith.constant 0 : index
    %c0_26 = arith.constant 0 : index
    %31 = vector.load %arg5[%c0_24, %c0_25, %c0_26] : memref<1x16x128xf32, #tpu.memory_space<vmem>>, vector<1x16x16xf32>
    %32 = vector.shape_cast %31 : vector<1x16x16xf32> to vector<16x16xf32>
    %33 = vector.shape_cast %19 : vector<16x16xf32> to vector<1x16x16xf32>
    tpu.vector_store %arg5[%c0_24, %c0_25, %c0_26], %33 {strides = array<i32>} : memref<1x16x128xf32, #tpu.memory_space<vmem>>, vector<1x16x16xf32>,
    return
  }
  func.func @transform_0(%arg0: i32, %arg1: i32) -> (i32, i32, i32, i32) {
    %c0_i32 = arith.constant 0 : i32
    %c0_i32_0 = arith.constant 0 : i32
    %c0_i32_1 = arith.constant 0 : i32
    return %arg0, %c0_i32, %arg1, %c0_i32_0 : i32, i32, i32, i32
  }
  func.func @transform_1(%arg0: i32, %arg1: i32) -> (i32, i32, i32, i32) {
    %c0_i32 = arith.constant 0 : i32
    %c0_i32_0 = arith.constant 0 : i32
    %c0_i32_1 = arith.constant 0 : i32
    return %arg0, %c0_i32, %arg1, %c0_i32_0 : i32, i32, i32, i32
  }
  func.func @transform_2(%arg0: i32, %arg1: i32) -> (i32, i32, i32) {
    %c0_i32 = arith.constant 0 : i32
    %c0_i32_0 = arith.constant 0 : i32
    return %arg0, %arg1, %c0_i32 : i32, i32, i32
  }
  func.func @transform_3(%arg0: i32, %arg1: i32) -> (i32, i32, i32) {
    %c0_i32 = arith.constant 0 : i32
    %c0_i32_0 = arith.constant 0 : i32
    return %arg0, %arg1, %c0_i32 : i32, i32, i32
  }
}

</mosaic_0001>

<bundles_post_ra>
// kernel: tpu_custom_call.1
= control target key start
LH: loop header
LB: loop body
LE: loop exit
PB: predicated region body
PF: predicated region fallthrough
CT: control target
= control target key end

     0   :  { %s1091_s0 = inlined_call_operand.hbm [shape: f32[2,4,16,16], index: 0, kind: input, shape index: {}]   ;;  %s1092_s1 = inlined_call_operand.hbm [shape: f32[2,4,16,16], index: 1, kind: input, shape index: {}]   ;;  %s1093_s2 = inlined_call_operand.hbm [shape: f32[2,16,128], index: 2, kind: output, shape index: {0}]   ;;  %s1094_s3 = inlined_call_operand.hbm [shape: f32[2,16,128], index: 3, kind: output, shape index: {1}]  }
   0x1   :  { %1095 = sst [smem:[#allocation14_spill]] %s1091_s0 }
   0x2   :  { %9 = vsyncpa [#allocation3], 0 }
   0x3   :  { %11 = vsyncpa [#allocation3 + $0x1], 0 }
   0x4   :  { %12 = vsyncpa [#allocation6], 0 }
   0x5   :  { %14 = vsyncpa [#allocation6 + $0x1], 0 }
   0x6   :  { %15 = vsyncpa [#allocation4], 0 }
   0x7   :  { %17 = vsyncpa [#allocation4 + $0x1], 0 }
   0x8   :  { %18 = vsyncpa [#allocation9], 0 }
   0x9   :  { %20 = vsyncpa [#allocation9 + $0x1], 0  ;;  %s831_s12 = smov 0   ;;  %s833_s13 = smov 0  }
   0xa   :  { %s835_s14 = smov 0   ;;  %s837_s15 = smov 0  }
   0xb   :  { %s839_s16 = smov 0   ;;  %s841_s17 = smov 0  }
   0xc LB: > { %s526_s18 = sadd.s32 4294967295, %s800_s17   ;;  %s527_s19 = sadd.s32 4294967294, %s800_s17   ;;  %s800_s17 = sphi %s841_s17, %s26_s17   ;;  %s796_s16 = sphi %s839_s16, %s1107_s16   ;;  %s792_s15 = sphi %s837_s15, %s1106_s15   ;;  %s788_s14 = sphi %s835_s14, %s1105_s14   ;;  %s784_s13 = sphi %s833_s13, %s1104_s13   ;;  %s780_s12 = sphi %s831_s12, %s1103_s12  }
   0xd   : > { %s38_s20 = sadd.s32 1, %s796_s16  ;;  %s47_s21 = sadd.s32 1, %s788_s14 }
   0xe   : > { %p40_p0 = scmp.ge.s32.totalorder %s38_s20, 2  ;;  %p54_p1 = scmp.ne.s32.totalorder %s788_s14, %s784_s13 }
   0xf   : > { %p55_p2 = scmp.eq.s32.totalorder %s800_s17, 0  ;;  %p60_p3 = scmp.ne.s32.totalorder %s784_s13, %s780_s12 }
  0x10   : > { %s1109_s20 = smov (%p40_p0, %s38_s20), 0  ;;  %p61_p5 = scmp.eq.s32.totalorder %s526_s18, 0 }
  0x11   : > { %p872_p4 = por %p55_p2, %p54_p1  ;;  %s42_s23 = ssub.s32 %s796_s16, %s1109_s20 }
  0x12   : > { %p114_p6 = scmp.eq.s32.totalorder %s526_s18, 1  ;;  %p45_p7 = scmp.eq.s32.totalorder %s42_s23, 0 }
  0x13   : > { %p878_p8 = por %p61_p5, %p60_p3  ;;  %p120_p10 = scmp.eq.s32.totalorder %s527_s19, 1 }
  0x14   : > { %p882_p9 = por %p114_p6, %p54_p1  ;;  %p529_p12 = scmp.ge.s32.totalorder %s800_s17, 2 }
  0x15   : > { %s887_s26 = scalar_select %p45_p7, %s788_s14, %s47_s21  }
  0x16   : > { %p889_p11 = por %p120_p10, %p60_p3  ;;  %p575_p13 = scmp.lt.s32.totalorder %s800_s17, 2 }
  0x17   : > { %s896_s28 = sand.u32 1, %s788_s14   ;;  %s549_s30 = sshll.u32 %s796_s16, 10 }
  0x18   : > { %s530_s29 = sshll.u32 %s896_s28, 6  ;;  %s1100_s0 = sld [smem:[#allocation14_spill]] }
  0x19   : > { %s172_s7 = scalar_lea.vmem [#allocation2], %s530_s29  ;;  %p909_p0 = pnand %p575_p13, %p872_p4 }
  0x1a   : > { %s181_s8 = sshll.u32 %s172_s7, 4  ;;  %p536_p1 = scmp.ge.s32.totalorder %s800_s17, 1  ;;  %s182_s8 = int_to_ptr.vmem [resolvable:$true] %s181_s8 }
  0x1b   : > { %s169_s10 = scalar_lea.sflag [#allocation3], %s896_s28  ;;  %p632_p2 = pneg %p909_p0 }
  0x1c   : > { %s643_s11 = scalar_lea.vmem %s182_s8, 1024  ;;  %s802_s18 = smov [#allocation2]  }
  0x1d   : > { %p644_p3 = scmp.ne.s32.totalorder %s182_s8, %s643_s11  ;;  %s648_s19 = sshll.u32 %s802_s18, 4  ;;  %s649_s19 = int_to_ptr.vmem [resolvable:$false] %s648_s19 }
  0x1e   : > { %s180_s6 = scalar_lea.hbm %s1100_s0, %s549_s30  ;;  %s650_s21 = scalar_lea.vmem %s649_s19, 2048 }
  0x1f   : > { %p646_p5 = pnand %p644_p3, %p632_p2  ;;  %p651_p4 = scmp.lt.s32.totalorder %s182_s8, %s649_s19 }
  0x20   : > { %p652_p7 = scmp.lt.s32.totalorder %s650_s21, %s643_s11 }
  0x21   : > { %p647_p6 = pneg %p646_p5 }
  0x22   : > { %p653_p10 = por %p652_p7, %p651_p4 }
  0x24   : > { %p654_p13 = pnand %p653_p10, %p647_p6 }
  0x26   : > { %657 = shalt.err (!%p654_p13)
}
  0x27   : > { %s803_s22 = smov 128   ;;  %s804_s23 = smov 8  }
  0x28   : > { %564 = dma.hbm_to_vmem [thread:$0]  (!%p909_p0), %s180_s6, 1024, %s182_s8, %s169_s10, %s803_s22, %s803_s22, %s804_s23  }
  0x29   : > { %p212_p3 = scmp.lt.s32.totalorder %s800_s17, 3  ;;  %s203_s7 = scalar_lea.hbm %s1092_s1, %s549_s30 }
  0x2a   : > { %s195_s18 = scalar_lea.vmem [#allocation5], %s530_s29  ;;  %s192_s21 = scalar_lea.sflag [#allocation6], %s896_s28 }
  0x2b   : > { %p930_p5 = pnand %p536_p1, %p212_p3  ;;  %s204_s19 = sshll.u32 %s195_s18, 4  ;;  %s205_s19 = int_to_ptr.vmem [resolvable:$true] %s204_s19 }
  0x2c   : > { %s671_s0 = scalar_lea.vmem %s205_s19, 1024  ;;  %s805_s6 = smov [#allocation5]  }
  0x2d   : > { %p672_p6 = scmp.ne.s32.totalorder %s205_s19, %s671_s0  ;;  %s676_s8 = sshll.u32 %s805_s6, 4  ;;  %s677_s8 = int_to_ptr.vmem [resolvable:$false] %s676_s8 }
  0x2e   : > { %s678_s30 = scalar_lea.vmem %s677_s8, 2048  ;;  %p679_p10 = scmp.lt.s32.totalorder %s205_s19, %s677_s8 }
  0x2f   : > { %p674_p4 = pnand %p672_p6, %p632_p2  ;;  %p680_p1 = scmp.lt.s32.totalorder %s678_s30, %s671_s0 }
  0x31   : > { %p675_p7 = pneg %p674_p4  ;;  %p681_p13 = por %p680_p1, %p679_p10 }
  0x33   : > { %p682_p3 = pnand %p681_p13, %p675_p7 }
  0x35   : > { %685 = shalt.err (!%p682_p3)
}
  0x36   : > { %567 = dma.hbm_to_vmem [thread:$0]  (!%p909_p0), %s203_s7, 1024, %s205_s19, %s192_s21, %s803_s22, %s803_s22, %s804_s23  }
  0x37   : > { %216 = sbr.rel (%p930_p5) target bundleno = 114 (0x72), region = 28  ;;  %s945_s28 = sand.u32 (!%p930_p5), 1, %s784_s13  }
  0x38   : > { %s537_s29 = sshll.u32 (!%p930_p5), %s945_s28, 6  ;;  %s219_s10 = scalar_lea.sflag (!%p930_p5), [#allocation3], %s945_s28 }
  0x39   : > { %s222_s4 = scalar_lea.vmem (!%p930_p5), [#allocation2], %s537_s29 }
  0x3c   : > { %763 = dma.done.wait (%p878_p8), %s219_s10, 1024  }
  0x3d   : > { %765 = vsyncadd (%p878_p8), %s219_s10, 4294966272  ;;  %s228_s0 = scalar_lea.sflag [#allocation6], %s945_s28  ;;  %s954_s9 = scalar_lea.vmem [#allocation5], %s537_s29 }
  0x3e   : > { %767 = dma.done.wait (%p878_p8), %s228_s0, 1024  }
  0x3f   : > { %769 = vsyncadd (%p878_p8), %s228_s0, 4294966272  ;;  %s539_s22 = sshll.u32 %s945_s28, 4  ;;  %v806_v0 = vmov 0.0   ;;  %vm276_vm0 = vcmask 130048   ;;  %v268_v1 = vld [vmem:[%s222_s4] sm:$0xff]  ;;  %v270_v2 = vld [vmem:[%s222_s4 + $0x10] sm:$0xff] }
  0x40   : > { %s961_s23 = scalar_lea.vmem [#allocation7], %s539_s22  ;;  %s965_s5 = scalar_lea.vmem [#allocation8], %s539_s22  ;;  %v272_v3 = vld [vmem:[%s222_s4 + $0x20] sm:$0xff]  ;;  %v274_v4 = vld [vmem:[%s222_s4 + $0x30] sm:$0xff]  ;;  %v277_v5 = vsel %vm276_vm0, %v268_v1, 0.0  ;;  %v278_v6 = vsel %vm276_vm0, %v270_v2, 0.0 }
  0x41   : > { %331 = vst [vmem:[%s961_s23] sm:$0xff] %v806_v0  ;;  %332 = vst [vmem:[%s961_s23 + $0x8] sm:$0xff] %v806_v0  ;;  %v280_v7 = vsel %vm276_vm0, %v272_v3, 0.0  ;;  %v269_v8 = vld [vmem:[%s222_s4 + $0x8] sm:$0xff]  ;;  %v271_v9 = vld [vmem:[%s222_s4 + $0x18] sm:$0xff]  ;;  %v279_v10 = vadd.f32 %v278_v6, %v277_v5  ;;  %v282_v16 = vsel %vm276_vm0, %v274_v4, 0.0  ;;  %s360_s24 = sshll.u32 %s961_s23, 4  ;;  %s996_s24 = int_to_ptr.vmem [resolvable:$true] %s360_s24 }
  0x42   : > { %333 = vst [vmem:[%s965_s5] sm:$0xff] %v806_v0  ;;  %334 = vst [vmem:[%s965_s5 + $0x8] sm:$0xff] %v806_v0  ;;  %v273_v11 = vld [vmem:[%s222_s4 + $0x28] sm:$0xff]  ;;  %v275_v12 = vld [vmem:[%s222_s4 + $0x38] sm:$0xff]  ;;  %v284_v13 = vsel %vm276_vm0, %v269_v8, 0.0  ;;  %v285_v14 = vsel %vm276_vm0, %v271_v9, 0.0  ;;  %s551_s7 = sshll.u32 %s792_s15, 8 }
  0x43   : > { %v294_v15 = vld [vmem:[%s954_s9] sm:$0xff]  ;;  %v286_v17 = vadd.f32 %v285_v14, %v284_v13  ;;  %v287_v18 = vsel %vm276_vm0, %v273_v11, 0.0  ;;  %v296_v19 = vld [vmem:[%s954_s9 + $0x10] sm:$0xff]  ;;  %v281_v23 = vadd.f32 %v280_v7, %v279_v10  ;;  %v289_v24 = vsel %vm276_vm0, %v275_v12, 0.0  ;;  %v295_v27 = vld [vmem:[%s954_s9 + $0x8] sm:$0xff]  ;;  %s378_s11 = sshll.u32 %s965_s5, 4  ;;  %s1001_s21 = scalar_lea.hbm %s1093_s2, %s551_s7  ;;  %s1003_s11 = int_to_ptr.vmem [resolvable:$true] %s378_s11 }
  0x44   : > { %v298_v20 = vld [vmem:[%s954_s9 + $0x20] sm:$0xff]  ;;  %v300_v21 = vld [vmem:[%s954_s9 + $0x30] sm:$0xff]  ;;  %v302_v22 = vsel %vm276_vm0, %v294_v15, 0.0  ;;  %v303_v25 = vsel %vm276_vm0, %v296_v19, 0.0  ;;  %v297_v28 = vld [vmem:[%s954_s9 + $0x18] sm:$0xff]  ;;  %v309_v33 = vsel %vm276_vm0, %v295_v27, 0.0  ;;  %s1012_s8 = scalar_lea.hbm %s1094_s3, %s551_s7 }
  0x45   : > { %v305_v26 = vsel %vm276_vm0, %v298_v20, 0.0  ;;  %v299_v29 = vld [vmem:[%s954_s9 + $0x28] sm:$0xff]  ;;  %v288_v30 = vadd.f32 %v287_v18, %v286_v17  ;;  %v304_v31 = vadd.f32 %v303_v25, %v302_v22  ;;  %v301_v32 = vld [vmem:[%s954_s9 + $0x38] sm:$0xff]  ;;  %v310_v34 = vsel %vm276_vm0, %v297_v28, 0.0  ;;  %s340_s30 = scalar_lea.sflag [#allocation4], %s945_s28  ;;  %s686_s29 = scalar_lea.vmem %s996_s24, 256 }
  0x46   : > { %v283_v35 = vadd.f32 %v282_v16, %v281_v23  ;;  %v307_v36 = vsel %vm276_vm0, %v300_v21, 0.0  ;;  %v311_v37 = vadd.f32 %v310_v34, %v309_v33  ;;  %v312_v38 = vsel %vm276_vm0, %v299_v29, 0.0  ;;  %p687_p8 = scmp.ne.s32.totalorder %s996_s24, %s686_s29  ;;  %s807_s10 = smov [#allocation7]  }
  0x47   : > { %v290_v39 = vadd.f32 %v289_v24, %v288_v30  ;;  %v306_v40 = vadd.f32 %v305_v26, %v304_v31  ;;  %v314_v41 = vsel %vm276_vm0, %v301_v32, 0.0  ;;  %s690_s4 = sshll.u32 %s807_s10, 4  ;;  %s691_s4 = int_to_ptr.vmem [resolvable:$false] %s690_s4 }
  0x48   : > { %v292_v42 = vmul.f32 0.25, %v283_v35  ;;  %v313_v43 = vadd.f32 %v312_v38, %v311_v37  ;;  %p688_p0 = pnand %p687_p8, %p882_p9  ;;  %s692_s0 = scalar_lea.vmem %s691_s4, 512 }
  0x49   : > { %v293_v44 = vmul.f32 0.25, %v290_v39  ;;  %v308_v45 = vadd.f32 %v307_v36, %v306_v40  ;;  %p693_p5 = scmp.lt.s32.totalorder %s996_s24, %s691_s4  ;;  %p694_p6 = scmp.lt.s32.totalorder %s692_s0, %s686_s29 }
  0x4a   : > { %335 = vst.msk [vmem:[%s961_s23] sm:$0xff] %vm276_vm0, %v292_v42  ;;  %v315_v46 = vadd.f32 %v314_v41, %v313_v43  ;;  %p689_p2 = pneg %p688_p0 }
  0x4b   : > { %336 = vst.msk [vmem:[%s961_s23 + $0x8] sm:$0xff] %vm276_vm0, %v293_v44  ;;  %v316_v47 = vmul.f32 0.25, %v308_v45  ;;  %p695_p4 = por %p694_p6, %p693_p5 }
  0x4c   : > { %v317_v48 = vmul.f32 0.25, %v315_v46 }
  0x4d   : > { %p696_p7 = pnand %p695_p4, %p689_p2 }
  0x4f   : > { %699 = shalt.err (!%p696_p7)
}
  0x50   : > { %s700_s9 = scalar_lea.hbm %s1001_s21, 256  ;;  %s704_s7 = scalar_lea.hbm %s1093_s2, 512 }
  0x51   : > { %p701_p10 = scmp.ne.s32.totalorder %s1001_s21, %s700_s9  ;;  %p705_p3 = scmp.lt.s32.totalorder %s1001_s21, %s1093_s2 }
  0x52   : > { %p706_p8 = scmp.lt.s32.totalorder %s704_s7, %s700_s9 }
  0x53   : > { %p702_p1 = pnand %p701_p10, %p882_p9 }
  0x54   : > { %p707_p0 = por %p706_p8, %p705_p3 }
  0x55   : > { %p703_p13 = pneg %p702_p1 }
  0x57   : > { %p708_p2 = pnand %p707_p0, %p703_p13 }
  0x59   : > { %711 = shalt.err (!%p708_p2)
}
  0x5a   : > { %s808_s15 = smov 128   ;;  %s809_s6 = smov 8   ;;  %337 = vst.msk [vmem:[%s965_s5] sm:$0xff] %vm276_vm0, %v316_v47  ;;  %338 = vst.msk [vmem:[%s965_s5 + $0x8] sm:$0xff] %vm276_vm0, %v317_v48 }
  0x5b   : > { %557 = dma.vmem_to_hbm [thread:$0]  (%p882_p9), %s996_s24, 256, %s1001_s21, %s340_s30, %s808_s15, %s808_s15, %s809_s6  }
  0x5c   : > { %s345_s29 = scalar_lea.sflag [#allocation9], %s945_s28  ;;  %s712_s10 = scalar_lea.vmem %s1003_s11, 256 }
  0x5d   : > { %p713_p5 = scmp.ne.s32.totalorder %s1003_s11, %s712_s10  ;;  %s810_s4 = smov [#allocation8]  }
  0x5e   : > { %s716_s0 = sshll.u32 %s810_s4, 4  ;;  %s717_s0 = int_to_ptr.vmem [resolvable:$false] %s716_s0 }
  0x5f   : > { %p714_p6 = pnand %p713_p5, %p882_p9  ;;  %s718_s9 = scalar_lea.vmem %s717_s0, 512 }
  0x60   : > { %p719_p7 = scmp.lt.s32.totalorder %s1003_s11, %s717_s0  ;;  %p720_p10 = scmp.lt.s32.totalorder %s718_s9, %s712_s10 }
  0x61   : > { %p715_p4 = pneg %p714_p6 }
  0x62   : > { %p721_p1 = por %p720_p10, %p719_p7 }
  0x64   : > { %p722_p13 = pnand %p721_p1, %p715_p4 }
  0x66   : > { %725 = shalt.err (!%p722_p13)
}
  0x67   : > { %s726_s5 = scalar_lea.hbm %s1012_s8, 256  ;;  %s730_s21 = scalar_lea.hbm %s1094_s3, 512 }
  0x68   : > { %p727_p3 = scmp.ne.s32.totalorder %s1012_s8, %s726_s5  ;;  %p731_p2 = scmp.lt.s32.totalorder %s1012_s8, %s1094_s3 }
  0x69   : > { %p732_p5 = scmp.lt.s32.totalorder %s730_s21, %s726_s5 }
  0x6a   : > { %p728_p8 = pnand %p727_p3, %p882_p9 }
  0x6b   : > { %p733_p6 = por %p732_p5, %p731_p2 }
  0x6c   : > { %p729_p0 = pneg %p728_p8 }
  0x6e   : > { %p734_p4 = pnand %p733_p6, %p729_p0 }
  0x70   : > { %737 = shalt.err (!%p734_p4)
}
  0x71   : > { %558 = dma.vmem_to_hbm [thread:$0]  (%p882_p9), %s1003_s11, 256, %s1012_s8, %s345_s29, %s808_s15, %s808_s15, %s809_s6  }
  0x72 PF: > { %s393_s23 = sand.u32 1, %s780_s12   ;;  %p569_p7 = pnand %p529_p12, %p889_p11 }
  0x73   : > { %s394_s7 = scalar_lea.sflag [#allocation4], %s393_s23 }
  0x74   : > { %p570_p10 = pneg %p569_p7 }
  0x76   : > { %771 = dma.done.wait (%p570_p10), %s394_s7, 256  }
  0x77   : > { %773 = vsyncadd (%p570_p10), %s394_s7, 4294967040  ;;  %s403_s18 = scalar_lea.sflag [#allocation9], %s393_s23 }
  0x78   : > { %775 = dma.done.wait (%p570_p10), %s403_s18, 256  }
  0x79   : > { %777 = vsyncadd (%p570_p10), %s403_s18, 4294967040  ;;  %s26_s17 = sadd.s32 1, %s800_s17   ;;  %s1103_s12 = smov %s784_s13 }
  0x7a   : > { %p23_p1 = scmp.ge.s32.totalorder %s26_s17, 4   ;;  %s1104_s13 = smov %s788_s14 }
  0x7b   : > { %s1105_s14 = smov %s887_s26  ;;  %s1106_s15 = smov %s796_s16 }
  0x7c   : > { %s1107_s16 = smov %s1109_s20  ;;  %25 = sbr.rel (!%p23_p1) target bundleno = 12 (0xc), region = 103 }
  0x81   :  { %408 = vsyncpa [#allocation3], 1 }
  0x82   :  { %410 = vsyncpa [#allocation3 + $0x1], 1 }
  0x83   :  { %411 = vsyncpa [#allocation6], 1 }
  0x84   :  { %413 = vsyncpa [#allocation6 + $0x1], 1 }
  0x85   :  { %414 = vsyncpa [#allocation4], 1 }
  0x86   :  { %416 = vsyncpa [#allocation4 + $0x1], 1 }
  0x87   :  { %417 = vsyncpa [#allocation9], 1 }
  0x88   :  { %419 = vsyncpa [#allocation9 + $0x1], 1 }

</bundles_post_ra>
